<compile_context>
chip_gen: v7x
topology: tpu7x:2x2x1
jax: 0.10.0
libtpu: 0.0.40
codegen_flags: <defaults>
</compile_context>

<pallas_src>
import math

import jax
import jax.numpy as jnp
from jax.experimental import pallas as pl
from jax.experimental.pallas import tpu as pltpu

_MIB = 1024 * 1024


def _round_up(n, m):
    return (n + m - 1) // m * m


def _ffn_kernel(x_ref, w1t_ref, w3t_ref, w2t_ref, o_ref, *scratch):
    """One (row-tile, hidden-tile) step of the fused SwiGLU FFN."""
    acc_ref = scratch[0] if scratch else o_ref   # fp32 accumulator, resident over h
    h = pl.program_id(1)

    @pl.when(h == 0)
    def _():
        acc_ref[...] = jnp.zeros_like(acc_ref)

    x = x_ref[...]                                                        # (tm, dim)

    # MXU-native (M,K) x (K,N) matmuls with fp32 accumulation.
    h1 = jnp.dot(x, w1t_ref[...], preferred_element_type=jnp.float32)    # (tm, th)
    h3 = jnp.dot(x, w3t_ref[...], preferred_element_type=jnp.float32)    # (tm, th)

    # SiLU(h1) * h3; sigmoid goes to the EUP slot, multiplies to the VPU.
    g = (h1 * jax.nn.sigmoid(h1) * h3).astype(w2t_ref.dtype)             # (tm, th)

    acc_ref[...] += jnp.dot(g, w2t_ref[...], preferred_element_type=jnp.float32)

    if scratch:  # out dtype != fp32: cast + store once after the last hidden step
        @pl.when(h == pl.num_programs(1) - 1)
        def _():
            o_ref[...] = acc_ref[...].astype(o_ref.dtype)


def _vmem_budget():
    """Returns (vmem_limit_bytes, tile_budget_bytes) derived from the local chip."""
    phys = 64 * _MIB                       # conservative (v7x-sized) fallback
    try:
        info = pltpu.get_tpu_info()
        for name in ("vmem_capacity_bytes", "vmem_size_bytes"):
            v = getattr(info, name, None)
            if v:
                phys = int(v)
                break
    except Exception:
        pass
    limit = min(phys - 8 * _MIB, 112 * _MIB)   # headroom for compiler scratch/spill
    budget = (limit * 6) // 7                  # what the tile-size heuristic may use
    return limit, budget


def _choose_tiles(rows, dim, hidden, x_bytes, w_bytes, out_bytes, budget):
    """Pick (tm, th, hidden_padded) so every VMEM buffer fits inside `budget`."""
    f32 = 4
    pack = {4: 8, 2: 16, 1: 32}.get(x_bytes, 8)     # sublane packing of row blocks
    rows_p = _round_up(rows, pack)

    def tm_align(t):
        if t >= 256:
            return t // 256 * 256                   # MXU-native row multiples
        return max(pack, t // pack * pack)

    # Row-tile candidates, largest first: tm is the key lever because the weight
    # slabs are re-streamed from HBM once per row tile.
    tm_list = []
    for t in (2048, 1536, 1024, 768, 512, 256, 128, 64, 32, 16, 8):
        t = tm_align(min(t, rows_p))
        if t not in tm_list:
            tm_list.append(t)

    # Hidden-tile candidates: prefer exact divisors of `hidden` (no per-call
    # weight padding), largest first.
    cands = [hidden] + [t for t in (4096, 2048, 1536, 1024, 768, 512, 384, 256, 128)
                        if t < hidden]
    th_div = [t for t in cands if t % 128 == 0 and hidden % t == 0]
    th_rest = [t for t in cands if t % 128 == 0 and t not in th_div]
    th_list = (th_div + th_rest) or [_round_up(hidden, 128)]

    def fits(tm, th):
        weights = 3 * dim * th * w_bytes * 2          # w1t + w3t + w2t, double-buffered
        io = tm * dim * 2 * (x_bytes + out_bytes)     # x + out blocks, double-buffered
        acc = tm * dim * f32                          # fp32 accumulator
        inter = tm * th * 16                          # h1, h3, sigmoid, g temporaries
        return weights + io + acc + inter <= budget

    for tm in tm_list:
        for th in th_list:
            if fits(tm, th):
                # Megacore: if all rows fit in one tile, split in two so both v7x
                # TensorCores get work (negligible extra cost on 1-TC chips).
                if tm >= rows_p and rows_p >= 2 * pack:
                    tm = _round_up(pl.cdiv(rows, 2), pack)
                return tm, th, _round_up(hidden, th)
    return pack, 128, _round_up(hidden, 128)


def feed_forward(x, w1, w2, w3, *, compute_dtype=None):
    """SwiGLU FFN: (silu(x @ w1.T) * (x @ w3.T)) @ w2.T via one fused Pallas kernel.

    compute_dtype: optionally cast x / weights (e.g. jnp.bfloat16) for the MXU and
    halved weight streaming; accumulation stays fp32, output keeps the promoted
    original dtype.
    """
    orig_shape = x.shape
    dim = orig_shape[-1]
    hidden = w1.shape[0]
    assert w1.shape == (hidden, dim)
    assert w3.shape == (hidden, dim)
    assert w2.shape == (dim, hidden)

    out_dtype = jnp.promote_types(x.dtype, w1.dtype)

    x2d = x.reshape(-1, dim)
    rows = x2d.shape[0]

    # Pre-transpose the weights once, outside the hot loop, so the kernel's three
    # matmuls run in MXU-native orientation.  (In a real model these would simply
    # be stored pre-transposed.)
    w1t = w1.T          # (dim, hidden)
    w3t = w3.T          # (dim, hidden)
    w2t = w2.T          # (hidden, dim)

    if compute_dtype is not None:
        x2d = x2d.astype(compute_dtype)
        w1t = w1t.astype(compute_dtype)
        w3t = w3t.astype(compute_dtype)
        w2t = w2t.astype(compute_dtype)

    x_bytes = jnp.dtype(x2d.dtype).itemsize
    w_bytes = jnp.dtype(w1t.dtype).itemsize
    out_bytes = jnp.dtype(out_dtype).itemsize

    vmem_limit, budget = _vmem_budget()
    tm, th, hidden_p = _choose_tiles(rows, dim, hidden, x_bytes, w_bytes,
                                     out_bytes, budget)

    # Zero-pad the weights only when th does not divide hidden; the tile chooser
    # prefers exact divisors so this is normally a no-op.  Zero pads contribute
    # exactly zero to the accumulator.
    pad_h = hidden_p - hidden
    if pad_h:
        w1t = jnp.pad(w1t, ((0, 0), (0, pad_h)))
        w3t = jnp.pad(w3t, ((0, 0), (0, pad_h)))
        w2t = jnp.pad(w2t, ((0, pad_h), (0, 0)))

    grid_m = pl.cdiv(rows, tm)       # ragged last row block handled by clipping
    grid_h = hidden_p // th

    # fp32 output: accumulate directly into the resident output block; otherwise
    # use an fp32 VMEM scratch accumulator and cast on the last hidden step.
    use_scratch = out_dtype != jnp.float32
    scratch_shapes = [pltpu.VMEM((tm, dim), jnp.float32)] if use_scratch else []

    out = pl.pallas_call(
        _ffn_kernel,
        out_shape=jax.ShapeDtypeStruct((rows, dim), out_dtype),
        grid_spec=pltpu.PrefetchScalarGridSpec(
            num_scalar_prefetch=0,
            grid=(grid_m, grid_h),
            in_specs=[
                pl.BlockSpec((tm, dim), lambda i, h: (i, 0)),    # x rows
                pl.BlockSpec((dim, th), lambda i, h: (0, h)),    # w1^T slab
                pl.BlockSpec((dim, th), lambda i, h: (0, h)),    # w3^T slab
                pl.BlockSpec((th, dim), lambda i, h: (h, 0)),    # w2^T slab
            ],
            out_specs=pl.BlockSpec((tm, dim), lambda i, h: (i, 0)),
            scratch_shapes=scratch_shapes,
        ),
        compiler_params=pltpu.CompilerParams(
            dimension_semantics=("parallel", "arbitrary"),
            vmem_limit_bytes=int(vmem_limit),
        ),
    )(x2d, w1t, w3t, w2t)

    return out.reshape(orig_shape[:-1] + (dim,))


if __name__ == "__main__":
    key = jax.random.PRNGKey(0)

    # Small shapes consistent with the module's config logic.
    batch, seq, dim = 2, 8, 128
    multiple_of = 64
    hidden = int(2 * (4 * dim) / 3)
    hidden = multiple_of * ((hidden + multiple_of - 1) // multiple_of)   # 384

    kx, k1, k2, k3 = jax.random.split(key, 4)
    x = jax.random.normal(kx, (batch, seq, dim), dtype=jnp.float32)
    s_in = 1.0 / math.sqrt(dim)
    s_hid = 1.0 / math.sqrt(hidden)
    w1 = jax.random.uniform(k1, (hidden, dim), jnp.float32, -s_in, s_in)
    w3 = jax.random.uniform(k3, (hidden, dim), jnp.float32, -s_in, s_in)
    w2 = jax.random.uniform(k2, (dim, hidden), jnp.float32, -s_hid, s_hid)

    out = feed_forward(x, w1, w2, w3)
    out = jax.block_until_ready(out)

    # Pure-JAX reference of the eval-mode forward (dropout = identity).
    h1 = x @ w1.T
    h3 = x @ w3.T
    ref = (h1 * jax.nn.sigmoid(h1) * h3) @ w2.T

    assert out.shape == ref.shape
    assert jnp.allclose(out, ref, atol=2e-3, rtol=2e-3), float(
        jnp.max(jnp.abs(out - ref)))

    print("KERNEL_OK")
</pallas_src>

<mosaic_0001>
module attributes {stable_mosaic.version = 11 : i64} {
  func.func @_ffn_kernel(%arg0: i32, %arg1: i32, %arg2: memref<8x128xf32, #tpu.memory_space<vmem>>, %arg3: memref<128x384xf32, #tpu.memory_space<vmem>>, %arg4: memref<128x384xf32, #tpu.memory_space<vmem>>, %arg5: memref<384x128xf32, #tpu.memory_space<vmem>>, %arg6: memref<8x128xf32, #tpu.memory_space<vmem>>) attributes {dimension_semantics = [#tpu.dimension_semantics<parallel>, #tpu.dimension_semantics<arbitrary>], iteration_bounds = array<i64: 2, 1>, scalar_prefetch = 0 : i64, scratch_operands = 0 : i64, tpu.core_type = #tpu.core_type<tc>, window_params = [{transform_indices = @transform_0, window_bounds = array<i64: 8, 128>}, {transform_indices = @transform_1, window_bounds = array<i64: 128, 384>}, {transform_indices = @transform_2, window_bounds = array<i64: 128, 384>}, {transform_indices = @transform_3, window_bounds = array<i64: 384, 128>}, {transform_indices = @transform_4, window_bounds = array<i64: 8, 128>}]} {
    %c0_i32 = arith.constant 0 : i32
    %0 = arith.cmpi eq, %arg1, %c0_i32 : i32
    %1 = arith.extui %0 : i1 to i32
    %c0_i32_0 = arith.constant 0 : i32
    %2 = arith.cmpi ne, %1, %c0_i32_0 : i32
    scf.if %2 {
      %cst_15 = arith.constant 0.000000e+00 : f32
      %20 = vector.broadcast %cst_15 : f32 to vector<8x128xf32>
      %c0_16 = arith.constant 0 : index
      %c0_17 = arith.constant 0 : index
      %21 = vector.load %arg6[%c0_16, %c0_17] : memref<8x128xf32, #tpu.memory_space<vmem>>, vector<8x128xf32>
      tpu.vector_store %arg6[%c0_16, %c0_17], %20 {strides = array<i32>} : memref<8x128xf32, #tpu.memory_space<vmem>>, vector<8x128xf32>,
    } else {
    }
    %c0 = arith.constant 0 : index
    %c0_1 = arith.constant 0 : index
    %3 = vector.load %arg2[%c0, %c0_1] : memref<8x128xf32, #tpu.memory_space<vmem>>, vector<8x128xf32>
    %c0_2 = arith.constant 0 : index
    %c0_3 = arith.constant 0 : index
    %4 = vector.load %arg3[%c0_2, %c0_3] : memref<128x384xf32, #tpu.memory_space<vmem>>, vector<128x384xf32>
    %cst = arith.constant dense<0.000000e+00> : vector<8x384xf32>
    %5 = tpu.matmul %3, %4, %cst {dimension_numbers = #tpu.dot_dimension_numbers<[1], [0], [0], [1], [0, 0, 1, 1], [], []>} : vector<8x128xf32>, vector<128x384xf32>, vector<8x384xf32> -> vector<8x384xf32>
    %c0_4 = arith.constant 0 : index
    %c0_5 = arith.constant 0 : index
    %6 = vector.load %arg4[%c0_4, %c0_5] : memref<128x384xf32, #tpu.memory_space<vmem>>, vector<128x384xf32>
    %cst_6 = arith.constant dense<0.000000e+00> : vector<8x384xf32>
    %7 = tpu.matmul %3, %6, %cst_6 {dimension_numbers = #tpu.dot_dimension_numbers<[1], [0], [0], [1], [0, 0, 1, 1], [], []>} : vector<8x128xf32>, vector<128x384xf32>, vector<8x384xf32> -> vector<8x384xf32>
    %8 = arith.negf %5 : vector<8x384xf32>
    %9 = math.exp %8 : vector<8x384xf32>
    %cst_7 = arith.constant 1.000000e+00 : f32
    %10 = vector.broadcast %cst_7 : f32 to vector<8x384xf32>
    %11 = arith.addf %10, %9 : vector<8x384xf32>
    %12 = arith.divf %10, %11 : vector<8x384xf32>
    %13 = arith.mulf %5, %12 : vector<8x384xf32>
    %14 = arith.mulf %13, %7 : vector<8x384xf32>
    %c0_8 = arith.constant 0 : index
    %c0_9 = arith.constant 0 : index
    %15 = vector.load %arg6[%c0_8, %c0_9] : memref<8x128xf32, #tpu.memory_space<vmem>>, vector<8x128xf32>
    %c0_10 = arith.constant 0 : index
    %c0_11 = arith.constant 0 : index
    %16 = vector.load %arg5[%c0_10, %c0_11] : memref<384x128xf32, #tpu.memory_space<vmem>>, vector<384x128xf32>
    %cst_12 = arith.constant dense<0.000000e+00> : vector<8x128xf32>
    %17 = tpu.matmul %14, %16, %cst_12 {dimension_numbers = #tpu.dot_dimension_numbers<[1], [0], [0], [1], [0, 0, 1, 1], [], []>} : vector<8x384xf32>, vector<384x128xf32>, vector<8x128xf32> -> vector<8x128xf32>
    %18 = arith.addf %15, %17 : vector<8x128xf32>
    %c0_13 = arith.constant 0 : index
    %c0_14 = arith.constant 0 : index
    %19 = vector.load %arg6[%c0_13, %c0_14] : memref<8x128xf32, #tpu.memory_space<vmem>>, vector<8x128xf32>
    tpu.vector_store %arg6[%c0_13, %c0_14], %18 {strides = array<i32>} : memref<8x128xf32, #tpu.memory_space<vmem>>, vector<8x128xf32>,
    return
  }
  func.func @transform_0(%arg0: i32, %arg1: i32) -> (i32, i32) {
    %c0_i32 = arith.constant 0 : i32
    %c0_i32_0 = arith.constant 0 : i32
    return %arg0, %c0_i32 : i32, i32
  }
  func.func @transform_1(%arg0: i32, %arg1: i32) -> (i32, i32) {
    %c0_i32 = arith.constant 0 : i32
    %c0_i32_0 = arith.constant 0 : i32
    return %c0_i32, %arg1 : i32, i32
  }
  func.func @transform_2(%arg0: i32, %arg1: i32) -> (i32, i32) {
    %c0_i32 = arith.constant 0 : i32
    %c0_i32_0 = arith.constant 0 : i32
    return %c0_i32, %arg1 : i32, i32
  }
  func.func @transform_3(%arg0: i32, %arg1: i32) -> (i32, i32) {
    %c0_i32 = arith.constant 0 : i32
    %c0_i32_0 = arith.constant 0 : i32
    return %arg1, %c0_i32 : i32, i32
  }
  func.func @transform_4(%arg0: i32, %arg1: i32) -> (i32, i32) {
    %c0_i32 = arith.constant 0 : i32
    %c0_i32_0 = arith.constant 0 : i32
    return %arg0, %c0_i32 : i32, i32
  }
}

</mosaic_0001>

<bundles_post_ra>
// kernel: tpu_custom_call.1
= control target key start
LH: loop header
LB: loop body
LE: loop exit
PB: predicated region body
PF: predicated region fallthrough
CT: control target
= control target key end

     0   :  { %9 = vsyncpa [#allocation3], 0  ;;  %s2078_s0 = inlined_call_operand.hbm [shape: f32[16,128], index: 0, kind: input, shape index: {}]   ;;  %s2079_s1 = inlined_call_operand.hbm [shape: f32[128,384], index: 1, kind: input, shape index: {}]   ;;  %s2080_s2 = inlined_call_operand.hbm [shape: f32[128,384], index: 2, kind: input, shape index: {}]   ;;  %s2081_s3 = inlined_call_operand.hbm [shape: f32[384,128], index: 3, kind: input, shape index: {}]   ;;  %s2082_s4 = inlined_call_operand.hbm [shape: f32[16,128], index: 4, kind: output, shape index: {}]  }
   0x1   :  { %11 = vsyncpa [#allocation3 + $0x1], 0 }
   0x2   :  { %12 = vsyncpa [#allocation6], 0 }
   0x3   :  { %13 = vsyncpa [#allocation9], 0 }
   0x4   :  { %14 = vsyncpa [#allocation4], 0 }
   0x5   :  { %16 = vsyncpa [#allocation4 + $0x1], 0  ;;  %s1758_s15 = smov 0   ;;  %s1760_s16 = smov 0  }
   0x6   :  { %s1762_s17 = smov 0   ;;  %s1764_s18 = smov 0  }
   0x7   :  { %s1766_s19 = smov 0   ;;  %s1768_s20 = smov 0  }
   0x8 LB: > { %s1022_s21 = sadd.s32 4294967295, %s1719_s20   ;;  %s1023_s22 = sadd.s32 4294967294, %s1719_s20   ;;  %s1719_s20 = sphi %s1768_s20, %s22_s20   ;;  %s1715_s19 = sphi %s1766_s19, %s2109_s19   ;;  %s1711_s18 = sphi %s1764_s18, %s2108_s18   ;;  %s1707_s17 = sphi %s1762_s17, %s2107_s17   ;;  %s1703_s16 = sphi %s1760_s16, %s2106_s16   ;;  %s1699_s15 = sphi %s1758_s15, %s2105_s15  }
   0x9   : > { %p54_p0 = scmp.ne.s32.totalorder %s1703_s16, %s1699_s15  ;;  %p1792_p1 = scmp.eq.s32.totalorder %s1022_s21, 0 }
   0xa   : > { %p1796_p2 = scmp.eq.s32.totalorder %s1022_s21, 1  ;;  %p162_p3 = scmp.eq.s32.totalorder %s1023_s22, 1 }
   0xb   : > { %s2088_s23 = scalar_select %p1792_p1, 1, 0 }
   0xc   : > { %s2089_s24 = scalar_select %p1796_p2, 1, 0 }
   0xd   : > { %p1802_p4 = por %p1792_p1, %p54_p0  ;;  %p1024_p5 = scmp.ge.s32.totalorder %s1719_s20, 1 }
   0xe   : > { %p1807_p6 = por %p162_p3, %p54_p0  ;;  %p169_p7 = scmp.lt.s32.totalorder %s1719_s20, 3 }
   0xf   : > { %s2090_s25 = scalar_select %p1802_p4, 1, 0 }
  0x10   : > { %s2091_s26 = scalar_select %p1807_p6, 1, 0 }
  0x11   : > { %p1812_p8 = pnand %p1024_p5, %p169_p7  ;;  %s1721_s28 = smov [#allocation5]  }
  0x12   : > { %2092 = sst [smem:[#allocation15_spill]] %s2091_s26  ;;  %s184_s29 = sshll.u32 %s1721_s28, 4  ;;  %s1816_s29 = int_to_ptr.vmem [resolvable:$true] %s184_s29 }
  0x13   : > { %s2093_s27 = scalar_select %p1812_p8, 1, 0 }
  0x14   : > { %p1419_p9 = pneg %p1812_p8  ;;  %s1722_s5 = smov [#allocation7]  }
  0x15   : > { %s200_s6 = sshll.u32 %s1722_s5, 4  ;;  %s1723_s7 = smov [#allocation8]   ;;  %s1827_s6 = int_to_ptr.vmem [resolvable:$true] %s200_s6 }
  0x16   : > { %p1823_p11 = pnand %p1419_p9, %p1792_p1  ;;  %s1829_s8 = sshll.u32 %s1723_s7, 4  ;;  %s217_s8 = int_to_ptr.vmem [resolvable:$true] %s1829_s8 }
  0x17   : > { %s1515_s11 = scalar_lea.hbm %s2079_s1, 6144 }
  0x18   : > { %p1516_p12 = scmp.ne.s32.totalorder %s2079_s1, %s1515_s11  ;;  %p1839_p13 = pneg %p1823_p11 }
  0x19   : > { %p1522_p5 = scmp.lt.u32.totalorder %s1515_s11, %s2079_s1 }
  0x1a   : > { %p1518_p0 = pnand %p1839_p13, %p1516_p12 }
  0x1c   : > { %p1519_p3 = pneg %p1518_p0 }
  0x1e   : > { %p1524_p7 = pnand %p1522_p5, %p1519_p3 }
  0x20   : > { %1527 = shalt.err (!%p1524_p7)
}
  0x21   : > { %s1528_s28 = scalar_lea.vmem %s1816_s29, 6144  ;;  %p1536_p1 = scmp.lt.s32.totalorder %s1816_s29, %s1816_s29 }
  0x22   : > { %p1529_p9 = scmp.ne.s32.totalorder %s1816_s29, %s1528_s28  ;;  %p1537_p4 = scmp.lt.s32.totalorder %s1528_s28, %s1528_s28 }
  0x24   : > { %p1531_p10 = pnand %p1529_p9, %p1839_p13  ;;  %p1538_p12 = por %p1537_p4, %p1536_p1 }
  0x26   : > { %p1532_p6 = pneg %p1531_p10 }
  0x28   : > { %p1539_p0 = pnand %p1538_p12, %p1532_p6 }
  0x2a   : > { %1542 = shalt.err (!%p1539_p0)
}
  0x2b   : > { %s1724_s5 = smov 384   ;;  %s1725_s7 = smov 24  }
  0x2c   : > { %1422 = dma.hbm_to_vmem [thread:$0]  (!%p1823_p11), %s2079_s1, 6144, %s1816_s29, [#allocation6], %s1724_s5, %s1724_s5, %s1725_s7  }
  0x2d   : > { %s1543_s13 = scalar_lea.hbm %s2080_s2, 6144 }
  0x2e   : > { %p1544_p1 = scmp.ne.s32.totalorder %s2080_s2, %s1543_s13  ;;  %p1550_p10 = scmp.lt.u32.totalorder %s1543_s13, %s2080_s2 }
  0x30   : > { %p1546_p4 = pnand %p1544_p1, %p1839_p13 }
  0x32   : > { %p1547_p6 = pneg %p1546_p4 }
  0x34   : > { %p1552_p3 = pnand %p1550_p10, %p1547_p6 }
  0x36   : > { %1555 = shalt.err (!%p1552_p3)
}
  0x37   : > { %s1556_s29 = scalar_lea.vmem %s1827_s6, 6144  ;;  %p1564_p12 = scmp.lt.s32.totalorder %s1827_s6, %s1827_s6 }
  0x38   : > { %p1557_p5 = scmp.ne.s32.totalorder %s1827_s6, %s1556_s29  ;;  %p1565_p0 = scmp.lt.s32.totalorder %s1556_s29, %s1556_s29 }
  0x3a   : > { %p1559_p7 = pnand %p1557_p5, %p1839_p13  ;;  %p1566_p1 = por %p1565_p0, %p1564_p12 }
  0x3c   : > { %p1560_p9 = pneg %p1559_p7 }
  0x3e   : > { %p1567_p4 = pnand %p1566_p1, %p1560_p9 }
  0x40   : > { %1570 = shalt.err (!%p1567_p4)
}
  0x41   : > { %1425 = dma.hbm_to_vmem [thread:$0]  (!%p1823_p11), %s2080_s2, 6144, %s1827_s6, [#allocation6], %s1724_s5, %s1724_s5, %s1725_s7  }
  0x42   : > { %s1571_s12 = scalar_lea.hbm %s2081_s3, 6144 }
  0x43   : > { %p1572_p6 = scmp.ne.s32.totalorder %s2081_s3, %s1571_s12  ;;  %p1578_p5 = scmp.lt.u32.totalorder %s1571_s12, %s2081_s3 }
  0x45   : > { %p1574_p10 = pnand %p1572_p6, %p1839_p13 }
  0x47   : > { %p1575_p3 = pneg %p1574_p10 }
  0x49   : > { %p1580_p7 = pnand %p1578_p5, %p1575_p3 }
  0x4b   : > { %1583 = shalt.err (!%p1580_p7)
}
  0x4c   : > { %s1584_s29 = scalar_lea.vmem %s217_s8, 6144  ;;  %p1592_p1 = scmp.lt.s32.totalorder %s217_s8, %s217_s8 }
  0x4d   : > { %p1585_p9 = scmp.ne.s32.totalorder %s217_s8, %s1584_s29  ;;  %p1593_p4 = scmp.lt.s32.totalorder %s1584_s29, %s1584_s29 }
  0x4f   : > { %p1587_p12 = pnand %p1585_p9, %p1839_p13  ;;  %p1594_p8 = por %p1593_p4, %p1592_p1 }
  0x51   : > { %p1588_p0 = pneg %p1587_p12 }
  0x53   : > { %p1595_p2 = pnand %p1594_p8, %p1588_p0 }
  0x55   : > { %1598 = shalt.err (!%p1595_p2)
}
  0x56   : > { %s1726_s6 = smov 128   ;;  %s1727_s14 = smov 8  }
  0x57   : > { %1428 = dma.hbm_to_vmem [thread:$0]  (!%p1823_p11), %s2081_s3, 6144, %s217_s8, [#allocation9], %s1726_s6, %s1726_s6, %s1727_s14  }
  0x58   : > { %s41_s26 = sadd.s32 1, %s1707_s17  ;;  %s34_s9 = sadd.s32 1, %s1715_s19 }
  0x59   : > { %p48_p2 = scmp.ne.s32.totalorder %s1707_s17, %s1703_s16  ;;  %p36_p8 = scmp.ge.s32.totalorder %s34_s9, 2 }
  0x5a   : > { %p49_p13 = scmp.eq.s32.totalorder %s1719_s20, 0  ;;  %p2096_p6 = scmp.ne.s32.totalorder %s2089_s24, 0 }
  0x5b   : > { %p1440_p3 = scmp.lt.s32.totalorder %s1719_s20, 2  ;;  %s2111_s9 = smov (%p36_p8, %s34_s9), 0 }
  0x5c   : > { %p1909_p10 = por %p2096_p6, %p48_p2  ;;  %p50_p5 = por %p49_p13, %p48_p2 }
  0x5d   : > { %s230_s30 = sand.u32 1, %s1707_s17   ;;  %s38_s11 = ssub.s32 %s1715_s19, %s2111_s9 }
  0x5e   : > { %p39_p7 = scmp.eq.s32.totalorder %s38_s11, 0  ;;  %s1029_s8 = sshll.u32 %s230_s30, 3 }
  0x5f   : > { %s1030_s12 = sshll.u32 %s1715_s19, 7  ;;  %s234_s28 = scalar_lea.vmem [#allocation2], %s1029_s8 }
  0x60   : > { %s1921_s13 = scalar_select %p39_p7, %s1707_s17, %s41_s26  }
  0x61   : > { %s1926_s24 = scalar_lea.hbm %s2078_s0, %s1030_s12  ;;  %s241_s29 = sshll.u32 %s234_s28, 4  ;;  %s1928_s29 = int_to_ptr.vmem [resolvable:$true] %s241_s29 }
  0x62   : > { %p1932_p11 = pnand %p1440_p3, %p50_p5  ;;  %s231_s14 = scalar_lea.sflag [#allocation3], %s230_s30 }
  0x63   : > { %s1599_s5 = scalar_lea.hbm %s1926_s24, 128  ;;  %s1604_s11 = scalar_lea.hbm %s2078_s0, 256 }
  0x64   : > { %p1600_p9 = scmp.ne.s32.totalorder %s1926_s24, %s1599_s5  ;;  %p1601_p12 = pneg %p1932_p11 }
  0x65   : > { %p1605_p4 = scmp.lt.u32.totalorder %s1926_s24, %s2078_s0  ;;  %p1606_p2 = scmp.lt.u32.totalorder %s1604_s11, %s1599_s5 }
  0x66   : > { %p1602_p0 = pnand %p1601_p12, %p1600_p9  ;;  %p1608_p13 = scmp.lt.u32.totalorder %s1599_s5, %s1926_s24 }
  0x67   : > { %p1607_p8 = por %p1606_p2, %p1605_p4 }
  0x68   : > { %p1603_p1 = pneg %p1602_p0 }
  0x69   : > { %p1609_p6 = por %p1608_p13, %p1607_p8 }
  0x6b   : > { %p1610_p3 = pnand %p1609_p6, %p1603_p1 }
  0x6d   : > { %1613 = shalt.err (!%p1610_p3)
}
  0x6e   : > { %s1614_s30 = scalar_lea.vmem %s1928_s29, 128  ;;  %s1728_s21 = smov [#allocation2]  }
  0x6f   : > { %p1615_p5 = scmp.ne.s32.totalorder %s1928_s29, %s1614_s30  ;;  %s1619_s22 = sshll.u32 %s1728_s21, 4  ;;  %s1620_s22 = int_to_ptr.vmem [resolvable:$false] %s1619_s22 }
  0x70   : > { %s1621_s28 = scalar_lea.vmem %s1620_s22, 256  ;;  %p1622_p0 = scmp.lt.s32.totalorder %s1928_s29, %s1620_s22 }
  0x71   : > { %p1617_p7 = pnand %p1615_p5, %p1601_p12  ;;  %p1623_p4 = scmp.lt.s32.totalorder %s1621_s28, %s1614_s30 }
  0x73   : > { %p1618_p9 = pneg %p1617_p7  ;;  %p1624_p2 = por %p1623_p4, %p1622_p0 }
  0x75   : > { %p1625_p8 = pnand %p1624_p2, %p1618_p9 }
  0x77   : > { %1628 = shalt.err (!%p1625_p8)
}
  0x78   : > { %1432 = dma.hbm_to_vmem [thread:$0]  (!%p1932_p11), %s1926_s24, 128, %s1928_s29, %s231_s14  }
  0x79   : > { %p2099_p1 = scmp.ne.s32.totalorder %s2093_s27, 0 }
  0x7a   : > { %s1964_s5 = sand.u32 (!%p2099_p1), 1, %s1703_s16   ;;  %p2100_p12 = scmp.ne.s32.totalorder (!%p2099_p1), %s2090_s25, 0 }
  0x7b   : > { %250 = sbr.rel (%p2099_p1) target bundleno = 651 (0x28b), region = 36  ;;  %s1032_s7 = sshll.u32 (!%p2099_p1), %s1964_s5, 3 }
  0x7c   : > { %s253_s26 = scalar_lea.sflag (!%p2099_p1), [#allocation3], %s1964_s5  ;;  %s1970_s11 = scalar_lea.vmem (!%p2099_p1), [#allocation2], %s1032_s7 }
  0x82   : > { %1682 = dma.done.wait (%p2100_p12), %s253_s26, 128  }
  0x83   : > { %1684 = vsyncadd (%p2100_p12), %s253_s26, 4294967168  ;;  %p2101_p11 = scmp.ne.s32.totalorder %s2088_s23, 0 }
  0x85   : > { %1686 = dma.done.wait (%p2101_p11), [#allocation6], 12288  }
  0x86   : > { %1688 = vsyncadd (%p2101_p11), [#allocation6], 4294955008 }
  0x87   : > { %1690 = dma.done.wait (%p2101_p11), [#allocation9], 6144  }
  0x88   : > { %1692 = vsyncadd (%p2101_p11), [#allocation9], 4294961152  ;;  %v1729_v0 = vmov 0.0|0.0   ;;  %vm1730_vm0 = vmmov 0   ;;  %v1731_v1 = vmov 0.0   ;;  %v303_v2 = vld [vmem:[#allocation5 + $0x8] sm:$0xff] }
  0x89   : > { %1267 = vmatprep.subr.bf16.mxu1 %v1729_v0  ;;  %1162 = vmatprep.mubr.msk.f32.mxu1 %vm1730_vm0, %v1731_v1  ;;  %v306_v3 = vld [vmem:[#allocation5 + $0x20] sm:$0xff]  ;;  %v304_v4 = vld [vmem:[#allocation5 + $0x10] sm:$0xff]  ;;  %v307_v6 = vld [vmem:[#allocation5 + $0x28] sm:$0xff]  ;;  %s1041_s23 = sshll.u32 %s1711_s18, 7  ;;  %s292_s25 = scalar_lea.vmem [#allocation10], %s1032_s7 }
  0x8a   : > { %414 = vmatprep.mubr.f32.mxu0 %v1731_v1  ;;  %v1235_v5 = vpack.c.bf16 %v306_v3, %v303_v2  ;;  %v302_v7 = vld [vmem:[#allocation5] sm:$0xff]  ;;  %v305_v8 = vld [vmem:[#allocation5 + $0x18] sm:$0xff]  ;;  %v1268_v9 = vpack.c.bf16 %v307_v6, %v304_v4  ;;  %v312_v12 = vld [vmem:[#allocation5 + $0x50] sm:$0xff]  ;;  %s909_s27 = sshll.u32 %s292_s25, 4  ;;  %s2029_s6 = scalar_lea.hbm %s2082_s4, %s1041_s23  ;;  %s2031_s27 = int_to_ptr.vmem [resolvable:$true] %s909_s27 }
  0x8b   : > { %v1237_v10 = vpack.c.bf16 %v305_v8, %v302_v7  ;;  %v309_v11 = vld [vmem:[#allocation5 + $0x38] sm:$0xff]  ;;  %v310_v13 = vld [vmem:[#allocation5 + $0x40] sm:$0xff]  ;;  %v308_v16 = vld [vmem:[#allocation5 + $0x30] sm:$0xff]  ;;  %s896_s14 = scalar_lea.sflag [#allocation4], %s1964_s5  ;;  %s1629_s8 = scalar_lea.vmem %s2031_s27, 128 }
  0x8c   : > { %1236 = vmatprep.subr.bf16.mxu0 %v1235_v5  ;;  %v1239_v14 = vpack.c.bf16 %v312_v12, %v309_v11  ;;  %v313_v15 = vld [vmem:[#allocation5 + $0x58] sm:$0xff]  ;;  %v311_v17 = vld [vmem:[#allocation5 + $0x48] sm:$0xff]  ;;  %1269 = vmatpush3.bf16.msra.mxu1 %v1268_v9  ;;  %v318_v21 = vld [vmem:[#allocation5 + $0x80] sm:$0xff]  ;;  %p1630_p13 = scmp.ne.s32.totalorder %s2031_s27, %s1629_s8  ;;  %s1732_s18 = smov [#allocation10]  }
  0x8d   : > { %1238 = vmatpush1.bf16.msra.mxu0 %v1237_v10  ;;  %v1271_v18 = vpack.c.bf16 %v313_v15, %v310_v13  ;;  %v1241_v19 = vpack.c.bf16 %v311_v17, %v308_v16  ;;  %v315_v20 = vld [vmem:[#allocation5 + $0x68] sm:$0xff]  ;;  %v316_v22 = vld [vmem:[#allocation5 + $0x70] sm:$0xff]  ;;  %1270 = vmatprep.subr.bf16.mxu1 %v1729_v0  ;;  %v314_v25 = vld [vmem:[#allocation5 + $0x60] sm:$0xff]  ;;  %s1633_s12 = sshll.u32 %s1732_s18, 4  ;;  %s1634_s12 = int_to_ptr.vmem [resolvable:$false] %s1633_s12 }
  0x8e   : > { %1240 = vmatprep.subr.bf16.mxu0 %v1239_v14  ;;  %v1243_v23 = vpack.c.bf16 %v318_v21, %v315_v20  ;;  %v319_v24 = vld [vmem:[#allocation5 + $0x88] sm:$0xff]  ;;  %v317_v26 = vld [vmem:[#allocation5 + $0x78] sm:$0xff]  ;;  %v324_v28 = vld [vmem:[#allocation5 + $0xb0] sm:$0xff]  ;;  %p1631_p6 = pnand %p1630_p13, %p1909_p10  ;;  %s1635_s30 = scalar_lea.vmem %s1634_s12, 256 }
  0x8f   : > { %v321_v27 = vld [vmem:[#allocation5 + $0x98] sm:$0xff]  ;;  %v1274_v29 = vpack.c.bf16 %v319_v24, %v316_v22  ;;  %v1245_v30 = vpack.c.bf16 %v317_v26, %v314_v25  ;;  %v322_v31 = vld [vmem:[#allocation5 + $0xa0] sm:$0xff]  ;;  %v320_v34 = vld [vmem:[#allocation5 + $0x90] sm:$0xff]  ;;  %p1636_p5 = scmp.lt.s32.totalorder %s2031_s27, %s1634_s12  ;;  %p1637_p7 = scmp.lt.s32.totalorder %s1635_s30, %s1629_s8 }
  0x90   : > { %1272 = vmatpush3.bf16.msra.mxu1 %v1271_v18  ;;  %v1247_v32 = vpack.c.bf16 %v324_v28, %v321_v27  ;;  %v325_v33 = vld [vmem:[#allocation5 + $0xb8] sm:$0xff]  ;;  %v323_v35 = vld [vmem:[#allocation5 + $0xa8] sm:$0xff]  ;;  %v330_v37 = vld [vmem:[#allocation5 + $0xe0] sm:$0xff]  ;;  %p1632_p3 = pneg %p1631_p6 }
  0x91   : > { %1242 = vmatpush1.bf16.msra.mxu0 %v1241_v19  ;;  %1273 = vmatprep.subr.bf16.mxu1 %v1729_v0  ;;  %v327_v36 = vld [vmem:[#allocation5 + $0xc8] sm:$0xff]  ;;  %v1277_v38 = vpack.c.bf16 %v325_v33, %v322_v31  ;;  %v1249_v39 = vpack.c.bf16 %v323_v35, %v320_v34  ;;  %v328_v40 = vld [vmem:[#allocation5 + $0xd0] sm:$0xff]  ;;  %v326_v43 = vld [vmem:[#allocation5 + $0xc0] sm:$0xff]  ;;  %p1638_p9 = por %p1637_p7, %p1636_p5 }
  0x92   : > { %1244 = vmatprep.subr.bf16.mxu0 %v1243_v23  ;;  %v1251_v41 = vpack.c.bf16 %v330_v37, %v327_v36  ;;  %v331_v42 = vld [vmem:[#allocation5 + $0xe8] sm:$0xff]  ;;  %v329_v44 = vld [vmem:[#allocation5 + $0xd8] sm:$0xff]  ;;  %v336_v46 = vld [vmem:[#allocation5 + $0x110] sm:$0xff] }
  0x93   : > { %v333_v45 = vld [vmem:[#allocation5 + $0xf8] sm:$0xff]  ;;  %v1280_v47 = vpack.c.bf16 %v331_v42, %v328_v40  ;;  %v1253_v48 = vpack.c.bf16 %v329_v44, %v326_v43  ;;  %v334_v49 = vld [vmem:[#allocation5 + $0x100] sm:$0xff]  ;;  %v332_v52 = vld [vmem:[#allocation5 + $0xf0] sm:$0xff]  ;;  %p1639_p0 = pnand %p1638_p9, %p1632_p3 }
  0x94   : > { %1275 = vmatpush3.bf16.msra.mxu1 %v1274_v29  ;;  %v1255_v50 = vpack.c.bf16 %v336_v46, %v333_v45  ;;  %v337_v51 = vld [vmem:[#allocation5 + $0x118] sm:$0xff]  ;;  %v335_v53 = vld [vmem:[#allocation5 + $0x108] sm:$0xff]  ;;  %v342_v55 = vld [vmem:[#allocation5 + $0x140] sm:$0xff] }
  0x95   : > { %1246 = vmatpush1.bf16.msra.mxu0 %v1245_v30  ;;  %1276 = vmatprep.subr.bf16.mxu1 %v1729_v0  ;;  %v339_v54 = vld [vmem:[#allocation5 + $0x128] sm:$0xff]  ;;  %v1283_v56 = vpack.c.bf16 %v337_v51, %v334_v49  ;;  %v1257_v57 = vpack.c.bf16 %v335_v53, %v332_v52  ;;  %v340_v58 = vld [vmem:[#allocation5 + $0x130] sm:$0xff]  ;;  %v338_v61 = vld [vmem:[#allocation5 + $0x120] sm:$0xff] }
  0x96   : > { %1248 = vmatprep.subr.bf16.mxu0 %v1247_v32  ;;  %v1259_v59 = vpack.c.bf16 %v342_v55, %v339_v54  ;;  %v343_v60 = vld [vmem:[#allocation5 + $0x148] sm:$0xff]  ;;  %v341_v62 = vld [vmem:[#allocation5 + $0x138] sm:$0xff]  ;;  %v348_v2 = vld [vmem:[#allocation5 + $0x170] sm:$0xff] }
  0x97   : > { %v345_v63 = vld [vmem:[#allocation5 + $0x158] sm:$0xff]  ;;  %v1286_v3 = vpack.c.bf16 %v343_v60, %v340_v58  ;;  %v1261_v4 = vpack.c.bf16 %v341_v62, %v338_v61  ;;  %v346_v5 = vld [vmem:[#allocation5 + $0x160] sm:$0xff]  ;;  %v344_v8 = vld [vmem:[#allocation5 + $0x150] sm:$0xff] }
  0x98   : > { %1278 = vmatpush3.bf16.msra.mxu1 %v1277_v38  ;;  %v1263_v6 = vpack.c.bf16 %v348_v2, %v345_v63  ;;  %v349_v7 = vld [vmem:[#allocation5 + $0x178] sm:$0xff]  ;;  %v347_v9 = vld [vmem:[#allocation5 + $0x168] sm:$0xff]  ;;  %v495_v11 = vld [vmem:[#allocation7 + $0x20] sm:$0xff] }
  0x99   : > { %1250 = vmatpush1.bf16.msra.mxu0 %v1249_v39  ;;  %1279 = vmatprep.subr.bf16.mxu1 %v1729_v0  ;;  %v492_v10 = vld [vmem:[#allocation7 + $0x8] sm:$0xff]  ;;  %v1289_v12 = vpack.c.bf16 %v349_v7, %v346_v5  ;;  %v1265_v13 = vpack.c.bf16 %v347_v9, %v344_v8  ;;  %v493_v14 = vld [vmem:[#allocation7 + $0x10] sm:$0xff]  ;;  %v491_v17 = vld [vmem:[#allocation7] sm:$0xff] }
  0x9a   : > { %1252 = vmatprep.subr.bf16.mxu0 %v1251_v41  ;;  %v1291_v15 = vpack.c.bf16 %v495_v11, %v492_v10  ;;  %v496_v16 = vld [vmem:[#allocation7 + $0x28] sm:$0xff]  ;;  %v494_v18 = vld [vmem:[#allocation7 + $0x18] sm:$0xff]  ;;  %v501_v20 = vld [vmem:[#allocation7 + $0x50] sm:$0xff] }
  0x9b   : > { %v498_v19 = vld [vmem:[#allocation7 + $0x38] sm:$0xff]  ;;  %v1324_v22 = vpack.c.bf16 %v496_v16, %v493_v14  ;;  %v1293_v23 = vpack.c.bf16 %v494_v18, %v491_v17  ;;  %v499_v24 = vld [vmem:[#allocation7 + $0x40] sm:$0xff]  ;;  %v497_v27 = vld [vmem:[#allocation7 + $0x30] sm:$0xff] }
  0x9c   : > { %1281 = vmatpush3.bf16.msra.mxu1 %v1280_v47  ;;  %v1996_v21 = vld [vmem:[%s1970_s11] sm:$0xff]  ;;  %v1295_v25 = vpack.c.bf16 %v501_v20, %v498_v19  ;;  %v500_v28 = vld [vmem:[#allocation7 + $0x48] sm:$0xff]  ;;  %v507_v30 = vld [vmem:[#allocation7 + $0x80] sm:$0xff] }
  0x9d   : > { %1254 = vmatpush1.bf16.msra.mxu0 %v1253_v48  ;;  %1282 = vmatprep.subr.bf16.mxu1 %v1729_v0  ;;  %v502_v26 = vld [vmem:[#allocation7 + $0x58] sm:$0xff]  ;;  %v504_v29 = vld [vmem:[#allocation7 + $0x68] sm:$0xff]  ;;  %v1297_v32 = vpack.c.bf16 %v500_v28, %v497_v27  ;;  %v505_v33 = vld [vmem:[#allocation7 + $0x70] sm:$0xff] }
  0x9e   : > { %1256 = vmatprep.subr.bf16.mxu0 %v1255_v50  ;;  %v1327_v31 = vpack.c.bf16 %v502_v26, %v499_v24  ;;  %v1299_v34 = vpack.c.bf16 %v507_v30, %v504_v29  ;;  %v508_v35 = vld [vmem:[#allocation7 + $0x88] sm:$0xff]  ;;  %v503_v36 = vld [vmem:[#allocation7 + $0x60] sm:$0xff]  ;;  %v506_v37 = vld [vmem:[#allocation7 + $0x78] sm:$0xff] }
  0x9f   : > { %v510_v38 = vld [vmem:[#allocation7 + $0x98] sm:$0xff]  ;;  %v513_v39 = vld [vmem:[#allocation7 + $0xb0] sm:$0xff]  ;;  %v1330_v40 = vpack.c.bf16 %v508_v35, %v505_v33  ;;  %v1301_v41 = vpack.c.bf16 %v506_v37, %v503_v36  ;;  %v511_v42 = vld [vmem:[#allocation7 + $0xa0] sm:$0xff] }
  0xa0   : > { %1284 = vmatpush3.bf16.msra.mxu1 %v1283_v56  ;;  %v1303_v43 = vpack.c.bf16 %v513_v39, %v510_v38  ;;  %v514_v44 = vld [vmem:[#allocation7 + $0xb8] sm:$0xff]  ;;  %v509_v45 = vld [vmem:[#allocation7 + $0x90] sm:$0xff]  ;;  %v512_v46 = vld [vmem:[#allocation7 + $0xa8] sm:$0xff] }
  0xa1   : > { %1258 = vmatpush1.bf16.msra.mxu0 %v1257_v57  ;;  %1285 = vmatprep.subr.bf16.mxu1 %v1729_v0  ;;  %v516_v47 = vld [vmem:[#allocation7 + $0xc8] sm:$0xff]  ;;  %v519_v48 = vld [vmem:[#allocation7 + $0xe0] sm:$0xff]  ;;  %v1333_v49 = vpack.c.bf16 %v514_v44, %v511_v42  ;;  %v1305_v50 = vpack.c.bf16 %v512_v46, %v509_v45  ;;  %v517_v51 = vld [vmem:[#allocation7 + $0xd0] sm:$0xff] }
  0xa2   : > { %1260 = vmatprep.subr.bf16.mxu0 %v1259_v59  ;;  %v1307_v52 = vpack.c.bf16 %v519_v48, %v516_v47  ;;  %v520_v53 = vld [vmem:[#allocation7 + $0xe8] sm:$0xff]  ;;  %v515_v54 = vld [vmem:[#allocation7 + $0xc0] sm:$0xff]  ;;  %v518_v55 = vld [vmem:[#allocation7 + $0xd8] sm:$0xff] }
  0xa3   : > { %v522_v56 = vld [vmem:[#allocation7 + $0xf8] sm:$0xff]  ;;  %v525_v57 = vld [vmem:[#allocation7 + $0x110] sm:$0xff]  ;;  %v1336_v58 = vpack.c.bf16 %v520_v53, %v517_v51  ;;  %v1309_v59 = vpack.c.bf16 %v518_v55, %v515_v54  ;;  %v523_v60 = vld [vmem:[#allocation7 + $0x100] sm:$0xff] }
  0xa4   : > { %1287 = vmatpush3.bf16.msra.mxu1 %v1286_v3  ;;  %v1311_v61 = vpack.c.bf16 %v525_v57, %v522_v56  ;;  %v526_v62 = vld [vmem:[#allocation7 + $0x118] sm:$0xff]  ;;  %v521_v63 = vld [vmem:[#allocation7 + $0xf0] sm:$0xff]  ;;  %v524_v2 = vld [vmem:[#allocation7 + $0x108] sm:$0xff] }
  0xa5   : > { %1262 = vmatpush1.bf16.msra.mxu0 %v1261_v4  ;;  %1288 = vmatprep.subr.bf16.mxu1 %v1729_v0  ;;  %v528_v3 = vld [vmem:[#allocation7 + $0x128] sm:$0xff]  ;;  %v531_v4 = vld [vmem:[#allocation7 + $0x140] sm:$0xff]  ;;  %v1339_v5 = vpack.c.bf16 %v526_v62, %v523_v60  ;;  %v529_v7 = vld [vmem:[#allocation7 + $0x130] sm:$0xff] }
  0xa6   : > { %1264 = vmatprep.subr.bf16.mxu0 %v1263_v6  ;;  %v1313_v6 = vpack.c.bf16 %v524_v2, %v521_v63  ;;  %v1315_v8 = vpack.c.bf16 %v531_v4, %v528_v3  ;;  %v532_v9 = vld [vmem:[#allocation7 + $0x148] sm:$0xff]  ;;  %v527_v10 = vld [vmem:[#allocation7 + $0x120] sm:$0xff]  ;;  %v530_v11 = vld [vmem:[#allocation7 + $0x138] sm:$0xff] }
  0xa7   : > { %v1342_v14 = vpack.c.bf16 %v532_v9, %v529_v7  ;;  %v535_v16 = vld [vmem:[#allocation7 + $0x160] sm:$0xff]  ;;  %v538_v18 = vld [vmem:[#allocation7 + $0x178] sm:$0xff]  ;;  %v533_v19 = vld [vmem:[#allocation7 + $0x150] sm:$0xff] }
  0xa8   : > { %1290 = vmatpush3.bf16.msra.mxu1 %v1289_v12  ;;  %v534_v12 = vld [vmem:[#allocation7 + $0x158] sm:$0xff]  ;;  %v536_v20 = vld [vmem:[#allocation7 + $0x168] sm:$0xff]  ;;  %v737_v24 = vld [vmem:[#allocation8 + $0x100] sm:$0xff] }
  0xa9   : > { %1266 = vmatpush1.bf16.msra.mxu0 %v1265_v13  ;;  %1323 = vmatprep.subr.bf16.mxu1 %v1729_v0  ;;  %v537_v13 = vld [vmem:[#allocation7 + $0x170] sm:$0xff]  ;;  %v721_v27 = vld [vmem:[#allocation8 + $0x80] sm:$0xff]  ;;  %v722_v28 = vld [vmem:[#allocation8 + $0x88] sm:$0xff] }
  0xaa   : > { %1292 = vmatprep.subr.bf16.mxu0 %v1291_v15  ;;  %v1317_v15 = vpack.c.bf16 %v530_v11, %v527_v10  ;;  %v1319_v17 = vpack.c.bf16 %v537_v13, %v534_v12  ;;  %v1347_v29 = vpack.c.bf16 %v722_v28, %v721_v27  ;;  %v705_v30 = vld [vmem:[#allocation8] sm:$0xff]  ;;  %v739_v33 = vld [vmem:[#allocation8 + $0x110] sm:$0xff]  ;;  %v724_v36 = vld [vmem:[#allocation8 + $0x98] sm:$0xff] }
  0xab   : > { %1163 = vmatmul.mubr.f32.vlgmr.msra.gmra.mrb[0].mxu1 %v1996_v21  ;;  %v707_v37 = vld [vmem:[#allocation8 + $0x10] sm:$0xff]  ;;  %v708_v38 = vld [vmem:[#allocation8 + $0x18] sm:$0xff]  ;;  %v726_v44 = vld [vmem:[#allocation8 + $0xa8] sm:$0xff] }
  0xac   : > { %415 = vmatmul.mubr.f32.vlgmr.msra.gmra.mrb[0].mxu0 %v1996_v21  ;;  %1325 = vmatpush3.bf16.msra.mxu1 %v1324_v22  ;;  %v1345_v22 = vpack.c.bf16 %v538_v18, %v535_v16  ;;  %v1353_v39 = vpack.c.bf16 %v708_v38, %v707_v37  ;;  %v709_v46 = vld [vmem:[#allocation8 + $0x20] sm:$0xff]  ;;  %v710_v47 = vld [vmem:[#allocation8 + $0x28] sm:$0xff]  ;;  %v728_v53 = vld [vmem:[#allocation8 + $0xb8] sm:$0xff] }
  0xad   : > { %1294 = vmatpush1.bf16.msra.mxu0 %v1293_v23  ;;  %1326 = vmatprep.subr.bf16.mxu1 %v1729_v0  ;;  %v1321_v23 = vpack.c.bf16 %v536_v20, %v533_v19  ;;  %v1357_v48 = vpack.c.bf16 %v710_v47, %v709_v46  ;;  %v711_v55 = vld [vmem:[#allocation8 + $0x30] sm:$0xff]  ;;  %v712_v56 = vld [vmem:[#allocation8 + $0x38] sm:$0xff]  ;;  %v730_v62 = vld [vmem:[#allocation8 + $0xc8] sm:$0xff] }
  0xae   : > { %1296 = vmatprep.subr.bf16.mxu0 %v1295_v25  ;;  %1197 = vmatprep.mubr.msk.f32.mxu1 %vm1730_vm0, %v1731_v1  ;;  %v738_v25 = vld [vmem:[#allocation8 + $0x108] sm:$0xff]  ;;  %v1361_v57 = vpack.c.bf16 %v712_v56, %v711_v55  ;;  %v713_v2 = vld [vmem:[#allocation8 + $0x40] sm:$0xff]  ;;  %v732_v9 = vld [vmem:[#allocation8 + $0xd8] sm:$0xff] }
  0xaf   : > { %603 = vmatprep.mubr.f32.mxu0 %v1731_v1  ;;  %v1380_v26 = vpack.c.bf16 %v738_v25, %v737_v24  ;;  %v714_v3 = vld [vmem:[#allocation8 + $0x48] sm:$0xff]  ;;  %v715_v11 = vld [vmem:[#allocation8 + $0x50] sm:$0xff]  ;;  %v716_v12 = vld [vmem:[#allocation8 + $0x58] sm:$0xff] }
  0xb0   : > { %1328 = vmatpush3.bf16.msra.mxu1 %v1327_v31  ;;  %v706_v31 = vld [vmem:[#allocation8 + $0x8] sm:$0xff]  ;;  %v1365_v4 = vpack.c.bf16 %v714_v3, %v713_v2  ;;  %v1369_v13 = vpack.c.bf16 %v716_v12, %v715_v11  ;;  %v717_v20 = vld [vmem:[#allocation8 + $0x60] sm:$0xff]  ;;  %v751_v24 = vld [vmem:[#allocation8 + $0x170] sm:$0xff] }
  0xb1   : > { %1298 = vmatpush1.bf16.msra.mxu0 %v1297_v32  ;;  %1329 = vmatprep.subr.bf16.mxu1 %v1729_v0  ;;  %v1349_v32 = vpack.c.bf16 %v706_v31, %v705_v30  ;;  %v734_v18 = vld [vmem:[#allocation8 + $0xe8] sm:$0xff]  ;;  %v752_v25 = vld [vmem:[#allocation8 + $0x178] sm:$0xff]  ;;  %v735_v27 = vld [vmem:[#allocation8 + $0xf0] sm:$0xff] }
  0xb2   : > { %1300 = vmatprep.subr.bf16.mxu0 %v1299_v34  ;;  %v740_v34 = vld [vmem:[#allocation8 + $0x118] sm:$0xff]  ;;  %v719_v30 = vld [vmem:[#allocation8 + $0x70] sm:$0xff] }
  0xb3   : > { %v1383_v35 = vpack.c.bf16 %v740_v34, %v739_v33  ;;  %v736_v28 = vld [vmem:[#allocation8 + $0xf8] sm:$0xff] }
  0xb4   : > { %1331 = vmatpush3.bf16.msra.mxu1 %v1330_v40  ;;  %v741_v40 = vld [vmem:[#allocation8 + $0x120] sm:$0xff]  ;;  %v720_v31 = vld [vmem:[#allocation8 + $0x78] sm:$0xff] }
  0xb5   : > { %1302 = vmatpush1.bf16.msra.mxu0 %v1301_v41  ;;  %1332 = vmatprep.subr.bf16.mxu1 %v1729_v0  ;;  %v742_v41 = vld [vmem:[#allocation8 + $0x128] sm:$0xff] }
  0xb6   : > { %1304 = vmatprep.subr.bf16.mxu0 %v1303_v43  ;;  %v1386_v42 = vpack.c.bf16 %v742_v41, %v741_v40  ;;  %v725_v43 = vld [vmem:[#allocation8 + $0xa0] sm:$0xff] }
  0xb7   : > { %v1355_v45 = vpack.c.bf16 %v726_v44, %v725_v43 }
  0xb8   : > { %1334 = vmatpush3.bf16.msra.mxu1 %v1333_v49  ;;  %v743_v49 = vld [vmem:[#allocation8 + $0x130] sm:$0xff] }
  0xb9   : > { %1306 = vmatpush1.bf16.msra.mxu0 %v1305_v50  ;;  %1335 = vmatprep.subr.bf16.mxu1 %v1729_v0  ;;  %v744_v50 = vld [vmem:[#allocation8 + $0x138] sm:$0xff] }
  0xba   : > { %1308 = vmatprep.subr.bf16.mxu0 %v1307_v52  ;;  %v1389_v51 = vpack.c.bf16 %v744_v50, %v743_v49  ;;  %v727_v52 = vld [vmem:[#allocation8 + $0xb0] sm:$0xff] }
  0xbb   : > { %v1359_v54 = vpack.c.bf16 %v728_v53, %v727_v52 }
  0xbc   : > { %1337 = vmatpush3.bf16.msra.mxu1 %v1336_v58  ;;  %v745_v58 = vld [vmem:[#allocation8 + $0x140] sm:$0xff] }
  0xbd   : > { %1310 = vmatpush1.bf16.msra.mxu0 %v1309_v59  ;;  %1338 = vmatprep.subr.bf16.mxu1 %v1729_v0  ;;  %v746_v59 = vld [vmem:[#allocation8 + $0x148] sm:$0xff] }
  0xbe   : > { %1312 = vmatprep.subr.bf16.mxu0 %v1311_v61  ;;  %v1392_v60 = vpack.c.bf16 %v746_v59, %v745_v58  ;;  %v729_v61 = vld [vmem:[#allocation8 + $0xc0] sm:$0xff] }
  0xbf   : > { %v1363_v63 = vpack.c.bf16 %v730_v62, %v729_v61 }
  0xc0   : > { %1340 = vmatpush3.bf16.msra.mxu1 %v1339_v5  ;;  %v747_v5 = vld [vmem:[#allocation8 + $0x150] sm:$0xff] }
  0xc1   : > { %1314 = vmatpush1.bf16.msra.mxu0 %v1313_v6  ;;  %1341 = vmatprep.subr.bf16.mxu1 %v1729_v0  ;;  %v748_v6 = vld [vmem:[#allocation8 + $0x158] sm:$0xff] }
  0xc2   : > { %1316 = vmatprep.subr.bf16.mxu0 %v1315_v8  ;;  %v1395_v7 = vpack.c.bf16 %v748_v6, %v747_v5  ;;  %v731_v8 = vld [vmem:[#allocation8 + $0xd0] sm:$0xff] }
  0xc3   : > { %v1367_v10 = vpack.c.bf16 %v732_v9, %v731_v8 }
  0xc4   : > { %1343 = vmatpush3.bf16.msra.mxu1 %v1342_v14  ;;  %v749_v14 = vld [vmem:[#allocation8 + $0x160] sm:$0xff] }
  0xc5   : > { %1318 = vmatpush1.bf16.msra.mxu0 %v1317_v15  ;;  %1344 = vmatprep.subr.bf16.mxu1 %v1729_v0  ;;  %v750_v15 = vld [vmem:[#allocation8 + $0x168] sm:$0xff] }
  0xc6   : > { %1320 = vmatprep.subr.bf16.mxu0 %v1319_v17  ;;  %v1398_v16 = vpack.c.bf16 %v750_v15, %v749_v14  ;;  %v733_v17 = vld [vmem:[#allocation8 + $0xe0] sm:$0xff] }
  0xc7   : > { %v1371_v19 = vpack.c.bf16 %v734_v18, %v733_v17 }
  0xc8   : > { %1346 = vmatpush3.bf16.msra.mxu1 %v1345_v22  ;;  %v718_v22 = vld [vmem:[#allocation8 + $0x68] sm:$0xff] }
  0xc9   : > { %1322 = vmatpush1.bf16.msra.mxu0 %v1321_v23  ;;  %1379 = vmatprep.subr.bf16.mxu1 %v1729_v0  ;;  %v1373_v23 = vpack.c.bf16 %v718_v22, %v717_v20 }
  0xca   : > { %1348 = vmatprep.subr.bf16.mxu0 %v1347_v29  ;;  %v1375_v29 = vpack.c.bf16 %v736_v28, %v735_v27 }
  0xcb   : > { %1198 = vmatmul.mubr.f32.vlgmr.msra.gmra.mrb[2].mxu1 %v1996_v21 }
  0xcc   : > { %604 = vmatmul.mubr.f32.vlgmr.msra.gmra.mrb[2].mxu0 %v1996_v21  ;;  %1232 = vmatprep.mubr.msk.f32.mxu1 %vm1730_vm0, %v1731_v1  ;;  %v723_v21 = vld [vmem:[#allocation8 + $0x90] sm:$0xff] }
  0xcd   : > { %1381 = vmatpush3.bf16.msra.mxu1 %v1380_v26  ;;  %1350 = vmatpush3.bf16.msra.mxu0 %v1349_v32  ;;  %v1351_v1 = vpack.c.bf16 %v724_v36, %v723_v21  ;;  %v1401_v26 = vpack.c.bf16 %v752_v25, %v751_v24  ;;  %v1377_v32 = vpack.c.bf16 %v720_v31, %v719_v30 }
  0xce   : > { %1382 = vmatprep.subr.bf16.mxu1 %v1729_v0 }
  0xcf   : > { %1352 = vmatprep.subr.bf16.mxu0 %v1351_v1 }
  0xd1   : > { %1384 = vmatpush3.bf16.msra.mxu1 %v1383_v35  ;;  %1354 = vmatpush3.bf16.msra.mxu0 %v1353_v39 }
  0xd2   : > { %1385 = vmatprep.subr.bf16.mxu1 %v1729_v0  ;;  %1356 = vmatprep.subr.bf16.mxu0 %v1355_v45 }
  0xd5   : > { %1387 = vmatpush3.bf16.msra.mxu1 %v1386_v42  ;;  %1358 = vmatpush3.bf16.msra.mxu0 %v1357_v48 }
  0xd6   : > { %1388 = vmatprep.subr.bf16.mxu1 %v1729_v0  ;;  %1360 = vmatprep.subr.bf16.mxu0 %v1359_v54 }
  0xd9   : > { %1390 = vmatpush3.bf16.msra.mxu1 %v1389_v51  ;;  %1362 = vmatpush3.bf16.msra.mxu0 %v1361_v57 }
  0xda   : > { %1391 = vmatprep.subr.bf16.mxu1 %v1729_v0  ;;  %1364 = vmatprep.subr.bf16.mxu0 %v1363_v63 }
  0xdd   : > { %1393 = vmatpush3.bf16.msra.mxu1 %v1392_v60  ;;  %1366 = vmatpush3.bf16.msra.mxu0 %v1365_v4 }
  0xde   : > { %1394 = vmatprep.subr.bf16.mxu1 %v1729_v0  ;;  %1368 = vmatprep.subr.bf16.mxu0 %v1367_v10 }
  0xe1   : > { %1396 = vmatpush3.bf16.msra.mxu1 %v1395_v7  ;;  %1370 = vmatpush3.bf16.msra.mxu0 %v1369_v13 }
  0xe2   : > { %1397 = vmatprep.subr.bf16.mxu1 %v1729_v0  ;;  %1372 = vmatprep.subr.bf16.mxu0 %v1371_v19 }
  0xe5   : > { %1399 = vmatpush3.bf16.msra.mxu1 %v1398_v16  ;;  %1374 = vmatpush3.bf16.msra.mxu0 %v1373_v23 }
  0xe6   : > { %1400 = vmatprep.subr.bf16.mxu1 %v1729_v0  ;;  %1376 = vmatprep.subr.bf16.mxu0 %v1375_v29 }
  0xe9   : > { %1402 = vmatpush3.bf16.msra.mxu1 %v1401_v26  ;;  %1378 = vmatpush3.bf16.msra.mxu0 %v1377_v32 }
 0x17e   : > { %v487_v33 = vpop.f32.mrb[0].mxu1 }
 0x17f   : > { %v416_v34 = vpop.f32.mrb[0].mxu0  ;;  %v1039_v35 = vmul.f32 -1.442695, %v487_v33  ;;  %v1164_v0 = vpop.f32.mrb[1].mxu1 }
 0x180   : > { %v1037_v21 = vmul.f32 -1.442695, %v416_v34  ;;  %v418_v36 = vpop.f32.mrb[1].mxu0 }
 0x181   : > { %v1038_v1 = vmul.f32 -1.442695, %v418_v36  ;;  %1503 = vpow2.f32 %v1039_v35 }
 0x182   : > { %1505 = vpow2.f32 %v1037_v21 }
 0x183   : > { %1507 = vpow2.f32 %v1038_v1 }
 0x18b   : > { %v1504_v37 = vpop.eup %1503 }
 0x18c   : > { %v1506_v38 = vpop.eup %1505  ;;  %v691_v39 = vadd.f32 1.0, %v1504_v37 }
 0x18d   : > { %v1508_v40 = vpop.eup %1507  ;;  %v689_v41 = vadd.f32 1.0, %v1506_v38 }
 0x18e   : > { %v690_v42 = vadd.f32 1.0, %v1508_v40  ;;  %1509 = vrcp.f32 %v691_v39 }
 0x18f   : > { %1511 = vrcp.f32 %v689_v41 }
 0x190   : > { %1513 = vrcp.f32 %v690_v42 }
 0x198   : > { %v1510_v43 = vpop.eup %1509 }
 0x199   : > { %v1512_v44 = vpop.eup %1511  ;;  %v700_v46 = vmul.f32 %v1510_v43, %v487_v33 }
 0x19a   : > { %v1514_v45 = vpop.eup %1513  ;;  %v698_v47 = vmul.f32 %v1512_v44, %v416_v34 }
 0x19b   : > { %v699_v48 = vmul.f32 %v1514_v45, %v418_v36 }
 0x19e   : > { %v676_v49 = vpop.f32.mrb[2].mxu1 }
 0x19f   : > { %v605_v50 = vpop.f32.mrb[2].mxu0  ;;  %v703_v51 = vmul.f32 %v700_v46, %v676_v49  ;;  %v1199_v54 = vpop.f32.mrb[3].mxu1 }
 0x1a0   : > { %v701_v52 = vmul.f32 %v698_v47, %v605_v50  ;;  %v607_v53 = vpop.f32.mrb[3].mxu0 }
 0x1a1   : > { %v702_v55 = vmul.f32 %v699_v48, %v607_v53  ;;  %1233 = vmatmul.mubr.f32.vlgmr.msra.gmra.mrb[4].mxu1 %v703_v51 }
 0x1a3   : > { %817 = vmatprep.mubr.f32.mxu0 %v702_v55 }
 0x1a4   : > { %818 = vmatmul.mubr.f32.vlgmr.msra.gmra.mrb[4].mxu0 %v701_v52 }
 0x274   : > { %v889_v56 = vpop.f32.mrb[4].mxu1 }
 0x275   : > { %v1234_v57 = vpop.f32.mrb[5].mxu1 }
 0x277   : > { %v1110_v58 = vpop.f32.mrb[4].mxu0 }
 0x278   : > { %v1111_v59 = vpop.f32.mrb[5].mxu0 }
 0x279   : > { %v1112_v60 = vadd.f32 %v1111_v59, %v1110_v58 }
 0x27b   : > { %v890_v61 = vadd.f32 %v1112_v60, %v889_v56 }
 0x27d   : > { %894 = vst [vmem:[%s292_s25] sm:$0xff] %v890_v61 }
 0x27e   : > { %1642 = shalt.err (!%p1639_p0)
}
 0x27f   : > { %s1643_s21 = scalar_lea.hbm %s2029_s6, 128  ;;  %s1647_s5 = scalar_lea.hbm %s2082_s4, 256 }
 0x280   : > { %p1644_p4 = scmp.ne.s32.totalorder %s2029_s6, %s1643_s21  ;;  %p1648_p1 = scmp.lt.u32.totalorder %s2029_s6, %s2082_s4 }
 0x281   : > { %p1649_p12 = scmp.lt.u32.totalorder %s1647_s5, %s1643_s21  ;;  %p1651_p13 = scmp.lt.u32.totalorder %s1643_s21, %s2029_s6 }
 0x282   : > { %p1645_p2 = pnand %p1644_p4, %p1909_p10 }
 0x283   : > { %p1650_p11 = por %p1649_p12, %p1648_p1 }
 0x284   : > { %p1646_p8 = pneg %p1645_p2 }
 0x285   : > { %p1652_p6 = por %p1651_p13, %p1650_p11 }
 0x287   : > { %p1653_p3 = pnand %p1652_p6, %p1646_p8 }
 0x289   : > { %1656 = shalt.err (!%p1653_p3)
}
 0x28a   : > { %1417 = dma.vmem_to_hbm [thread:$0]  (%p1909_p10), %s2031_s27, 128, %s2029_s6, %s896_s14  }
 0x28b PF: > { %s2102_s11 = sld [smem:[#allocation15_spill]]  ;;  %s921_s23 = sand.u32 1, %s1699_s15  }
 0x28c   : > { %p2104_p7 = scmp.ge.s32.totalorder %s1719_s20, 2  ;;  %s922_s25 = scalar_lea.sflag [#allocation4], %s921_s23 }
 0x291   : > { %p2103_p5 = scmp.ne.s32.totalorder %s2102_s11, 0 }
 0x293   : > { %p1434_p9 = pnand %p2104_p7, %p2103_p5 }
 0x295   : > { %1694 = dma.done.wait (!%p1434_p9), %s922_s25, 128  }
 0x296   : > { %1696 = vsyncadd (!%p1434_p9), %s922_s25, 4294967168  ;;  %s22_s20 = sadd.s32 1, %s1719_s20   ;;  %s2105_s15 = smov %s1703_s16 }
 0x297   : > { %p19_p0 = scmp.ge.s32.totalorder %s22_s20, 4   ;;  %s2106_s16 = smov %s1707_s17 }
 0x298   : > { %s2107_s17 = smov %s1921_s13  ;;  %s2108_s18 = smov %s1715_s19 }
 0x299   : > { %s2109_s19 = smov %s2111_s9  ;;  %21 = sbr.rel (!%p19_p0) target bundleno = 8 (0x8), region = 100 }
 0x2a0   :  { %927 = vsyncpa [#allocation3], 1 }
 0x2a1   :  { %929 = vsyncpa [#allocation3 + $0x1], 1 }
 0x2a2   :  { %930 = vsyncpa [#allocation6], 1 }
 0x2a3   :  { %931 = vsyncpa [#allocation9], 1 }
 0x2a4   :  { %932 = vsyncpa [#allocation4], 1 }
 0x2a5   :  { %934 = vsyncpa [#allocation4 + $0x1], 1 }

</bundles_post_ra>
